<compile_context>
chip_gen: v6e
topology: v6e:2x2x1
jax: 0.10.0
libtpu: 0.0.40
codegen_flags: <defaults>
</compile_context>

<pallas_src>
import functools

import jax
import jax.numpy as jnp
from jax import lax
from jax.experimental import pallas as pl
from jax.experimental.pallas import tpu as pltpu

_PN_EPS = 1e-8          # PixelNorm epsilon (torch module)
_BN_EPS = 1e-5          # nn.BatchNorm2d default eps
_LEAKY_SLOPE = 0.2
_LANE = 128
_TARGET_BLOCK = 2 * 1024 * 1024      # ~2 MiB of f32 work per grid step (~roofline tile)
_VMEM_LIMIT = 32 * 1024 * 1024       # explicit; safe on v5e/v6e (128 MiB) and v7x (64 MiB)

_COMPILER_PARAMS = pltpu.CompilerParams(
    dimension_semantics=("parallel", "parallel"),   # batch tiles x HW tiles independent
    vmem_limit_bytes=_VMEM_LIMIT,
)

factors = [1, 1, 1, 1, 1 / 2, 1 / 4, 1 / 8, 1 / 16, 1 / 32]


def _round_up(x, m):
    return (x + m - 1) // m * m


def _pack_batch(n, slab_bytes):
    """Largest divisor of n whose packed block stays <= _TARGET_BLOCK."""
    cap = max(1, _TARGET_BLOCK // max(slab_bytes, 1))
    for d in range(min(n, cap), 0, -1):
        if n % d == 0:
            return d
    return 1


def _plan_tiles(n, c, hw):
    """Pick (b_tile, t_hw, hw_pad) so each grid step moves ~_TARGET_BLOCK bytes.

    Keeps the last (lane) dim a multiple of 128 *or* the full dim, keeps VMEM
    bounded, avoids pad/slice copies for small non-aligned maps, and collapses
    the grid for tiny tensors so the ~0.35 us/step overhead does not dominate.
    """
    slab = c * hw * 4
    if hw % _LANE != 0 and slab <= _TARGET_BLOCK:
        # Non-lane-aligned HW (1x1 / 4x4 / 8x8 maps in this net): use the full dim
        # as the block (allowed) -> no pad+slice HBM copy pass around the kernel.
        return _pack_batch(n, slab), hw, hw
    hw_pad = _round_up(hw, _LANE)
    if n * c * hw_pad * 4 <= _TARGET_BLOCK:
        return n, hw_pad, hw_pad                      # whole tensor in one grid step
    row_bytes = c * 4
    t_hw = max(_LANE, min(hw_pad, (_TARGET_BLOCK // row_bytes) // _LANE * _LANE))
    hw_pad = _round_up(hw_pad, t_hw)
    slab_bytes = c * hw_pad * 4
    b_tile = 1
    if slab_bytes < _TARGET_BLOCK:
        b_tile = _pack_batch(n, slab_bytes)
    return b_tile, t_hw, hw_pad


# ----------------------------------------------------------------------------
# Kernel 1: PixelNorm  (y = x * rsqrt(mean(x^2, dim=C) + eps))
# ----------------------------------------------------------------------------
def _pixel_norm_kernel(x_ref, o_ref, *, inv_c):
    x = x_ref[...].astype(jnp.float32)                 # f32 accumulation (bf16-safe)
    ss = jnp.sum(x * x, axis=1, keepdims=True)         # channel (sublane-axis) reduction
    # rsqrt goes to the EUP (its own VLIW slot) instead of a VALU divide chain;
    # the 1/C of jnp.mean is folded into a compile-time constant.
    o_ref[...] = (x * lax.rsqrt(ss * inv_c + _PN_EPS)).astype(o_ref.dtype)


def _pixel_norm_ref(x):
    x32 = x.astype(jnp.float32)
    return (x32 * lax.rsqrt(jnp.mean(x32 * x32, axis=1, keepdims=True) + _PN_EPS)).astype(x.dtype)


def pixel_norm(x: jax.Array, use_pallas: bool = True) -> jax.Array:
    """PixelNorm over the channel dim of an NCHW tensor via a Pallas TPU kernel."""
    if not use_pallas:
        return _pixel_norm_ref(x)
    N, C, H, W = x.shape
    HW = H * W
    x3 = x.reshape(N, C, HW)
    b_tile, t_hw, hw_pad = _plan_tiles(N, C, HW)
    if hw_pad != HW:
        x3 = jnp.pad(x3, ((0, 0), (0, 0), (0, hw_pad - HW)))   # lane-dense padding
    grid = (N // b_tile, hw_pad // t_hw)

    out = pl.pallas_call(
        functools.partial(_pixel_norm_kernel, inv_c=1.0 / C),
        out_shape=jax.ShapeDtypeStruct((N, C, hw_pad), x.dtype),
        grid_spec=pltpu.PrefetchScalarGridSpec(
            num_scalar_prefetch=0,
            grid=grid,
            in_specs=[pl.BlockSpec((b_tile, C, t_hw), lambda n, h: (n, 0, h))],
            out_specs=pl.BlockSpec((b_tile, C, t_hw), lambda n, h: (n, 0, h)),
        ),
        compiler_params=_COMPILER_PARAMS,
    )(x3)

    if hw_pad != HW:
        out = out[:, :, :HW]
    return out.reshape(N, C, H, W)


# ----------------------------------------------------------------------------
# Kernel 2: fused per-(n,c) affine + LeakyReLU
#   y = leaky_relu(scale[n,c] * x[n,c,h,w] + shift[n,c], slope)
# Used for: WSConv2d bias(+leaky), ConditionalBatchNorm2d normalize+affine(+leaky).
# ----------------------------------------------------------------------------
def _affine_leaky_kernel(x_ref, scale_ref, shift_ref, o_ref, *, slope):
    x = x_ref[...].astype(jnp.float32)
    z = x * scale_ref[...] + shift_ref[...]             # (b,C,1) lane-broadcast over HW
    if slope != 1.0:                                    # static: branch resolved at trace
        z = jnp.where(z >= 0, z, slope * z)
    o_ref[...] = z.astype(o_ref.dtype)


def _affine_leaky_ref(x, scale, shift, slope):
    N, C = x.shape[0], x.shape[1]
    s = jnp.broadcast_to(scale.reshape(-1, C), (N, C)).astype(jnp.float32)[:, :, None, None]
    b = jnp.broadcast_to(shift.reshape(-1, C), (N, C)).astype(jnp.float32)[:, :, None, None]
    z = x.astype(jnp.float32) * s + b
    if slope != 1.0:
        z = jnp.where(z >= 0, z, slope * z)
    return z.astype(x.dtype)


def affine_leaky(x: jax.Array, scale: jax.Array, shift: jax.Array,
                 slope: float = _LEAKY_SLOPE, use_pallas: bool = True) -> jax.Array:
    """Tiled elementwise per-(n,c) affine + optional LeakyReLU over an NCHW tensor."""
    if not use_pallas:
        return _affine_leaky_ref(x, scale, shift, slope)
    N, C, H, W = x.shape
    HW = H * W
    x3 = x.reshape(N, C, HW)
    # scale/shift may be (C,) or (N, C); present them as (N, C, 1) so the broadcast
    # inside the kernel is a cheap lane-broadcast (tiny extra DMA, free VALU mul).
    scale3 = jnp.broadcast_to(scale.reshape(-1, C), (N, C)).astype(jnp.float32).reshape(N, C, 1)
    shift3 = jnp.broadcast_to(shift.reshape(-1, C), (N, C)).astype(jnp.float32).reshape(N, C, 1)

    b_tile, t_hw, hw_pad = _plan_tiles(N, C, HW)
    if hw_pad != HW:
        x3 = jnp.pad(x3, ((0, 0), (0, 0), (0, hw_pad - HW)))
    grid = (N // b_tile, hw_pad // t_hw)

    out = pl.pallas_call(
        functools.partial(_affine_leaky_kernel, slope=float(slope)),
        out_shape=jax.ShapeDtypeStruct((N, C, hw_pad), x.dtype),
        grid_spec=pltpu.PrefetchScalarGridSpec(
            num_scalar_prefetch=0,
            grid=grid,
            in_specs=[
                pl.BlockSpec((b_tile, C, t_hw), lambda n, h: (n, 0, h)),
                pl.BlockSpec((b_tile, C, 1), lambda n, h: (n, 0, 0)),
                pl.BlockSpec((b_tile, C, 1), lambda n, h: (n, 0, 0)),
            ],
            out_specs=pl.BlockSpec((b_tile, C, t_hw), lambda n, h: (n, 0, h)),
        ),
        compiler_params=_COMPILER_PARAMS,
    )(x3, scale3, shift3)

    if hw_pad != HW:
        out = out[:, :, :HW]
    return out.reshape(N, C, H, W)


# ----------------------------------------------------------------------------
# Discriminator building blocks (params as plain pytrees, forward in JAX +
# the two Pallas kernels above).
# ----------------------------------------------------------------------------
def ws_conv_params(key, in_ch, out_ch, k):
    # matches WSConv2d init: weight ~ N(0,1), bias = 0, scale = sqrt(2/(in*k*k))
    w = jax.random.normal(key, (out_ch, in_ch, k, k), jnp.float32)
    b = jnp.zeros((out_ch,), jnp.float32)
    return {"w": w, "b": b, "scale": (2.0 / (in_ch * k * k)) ** 0.5}


def ws_conv_raw(p, x, stride=1, padding=1):
    # conv(x * scale) == conv(x, w * scale); bias is applied later (fused in Pallas).
    # TODO(synk): the convolution itself stays on XLA's conv (MXU); no hand-written Pallas conv.
    w = p["w"] * p["scale"]
    return lax.conv_general_dilated(
        x, w, window_strides=(stride, stride),
        padding=[(padding, padding), (padding, padding)],
        dimension_numbers=("NCHW", "OIHW", "NCHW"))


def ws_conv_bias_leaky(p, x, stride=1, padding=1, slope=_LEAKY_SLOPE, use_pallas=True):
    y = ws_conv_raw(p, x, stride, padding)
    # fused bias (+leaky); the unit scale multiply is free filler on a mem-bound kernel.
    return affine_leaky(y, jnp.ones_like(p["b"]), p["b"], slope, use_pallas)


def cbn_embed_params(key, num_features, num_classes):
    gamma = 1.0 + 0.02 * jax.random.normal(key, (num_classes, num_features), jnp.float32)
    beta = jnp.zeros((num_classes, num_features), jnp.float32)
    return jnp.concatenate([gamma, beta], axis=1)       # (num_classes, 2*num_features)


def cbn_leaky(embed_w, z, labels, slope=_LEAKY_SLOPE, use_pallas=True):
    """ConditionalBatchNorm2d (training-mode batch stats, affine=False BN) + LeakyReLU.

    `z` is the pre-bias WSConv2d output: the per-channel conv bias is cancelled
    exactly by the affine=False BatchNorm (batch-stats mode) that follows, so it
    is omitted.
    """
    C = embed_w.shape[1] // 2
    gb = embed_w[labels]                                # (N, 2C) embedding lookup
    gamma, beta = gb[:, :C], gb[:, C:]
    z32 = z.astype(jnp.float32)
    # TODO(synk): BN batch-statistics reduction kept in plain JAX (tiny per-channel
    # reduce); single fused pass: E[x] and E[x^2] -> biased var (torch training mode).
    mean = jnp.mean(z32, axis=(0, 2, 3))
    ex2 = jnp.mean(z32 * z32, axis=(0, 2, 3))
    var = jnp.maximum(ex2 - mean * mean, 0.0)
    inv = lax.rsqrt(var + _BN_EPS)
    scale = gamma * inv[None, :]                        # (N, C)
    shift = beta - gamma * (mean * inv)[None, :]        # (N, C)
    return affine_leaky(z, scale, shift, slope, use_pallas)   # fused normalize+affine+leaky


def conv_block(block, x, labels, use_pn=False, use_pallas=True):
    z = ws_conv_raw(block["conv1"], x, padding=1)
    x = cbn_leaky(block["cbn1"], z, labels, use_pallas=use_pallas)
    if use_pn:                                          # Discriminator uses use_pn=False
        x = pixel_norm(x, use_pallas)
    z = ws_conv_raw(block["conv2"], x, padding=1)
    x = cbn_leaky(block["cbn2"], z, labels, use_pallas=use_pallas)
    if use_pn:
        x = pixel_norm(x, use_pallas)
    return x


def avg_pool2(x):
    # TODO(synk): 2x2 average pool kept in plain JAX (reshape+mean).
    N, C, H, W = x.shape
    return x.reshape(N, C, H // 2, 2, W // 2, 2).mean(axis=(3, 5))


def minibatch_std(x):
    # TODO(synk): minibatch-std global reduction kept in plain JAX.
    # torch.std(x, dim=0) is unbiased (ddof=1), then .mean() over everything.
    stat = jnp.std(x.astype(jnp.float32), axis=0, ddof=1).mean()
    N, _, H, W = x.shape
    stat_map = jnp.broadcast_to(stat.astype(x.dtype), (N, 1, H, W))
    return jnp.concatenate([x, stat_map], axis=1)


def final_block(fb, x, use_pallas=True):
    p1, p2, p3 = fb
    x = ws_conv_bias_leaky(p1, x, padding=1, use_pallas=use_pallas)            # 3x3 + bias + leaky
    x = ws_conv_bias_leaky(p2, x, padding=0, use_pallas=use_pallas)            # 4x4 + bias + leaky
    x = ws_conv_bias_leaky(p3, x, padding=0, slope=1.0, use_pallas=use_pallas)  # 1x1 + bias
    return x


def init_discriminator(key, in_channels, img_channels=3, num_classes=2):
    params = {"prog_blocks": [], "rgb_layers": []}
    for i in range(len(factors) - 1, 0, -1):
        conv_in = int(in_channels * factors[i])
        conv_out = int(in_channels * factors[i - 1])
        key, k1, k2, k3, k4, k5 = jax.random.split(key, 6)
        params["prog_blocks"].append({
            "conv1": ws_conv_params(k1, conv_in, conv_out, 3),
            "conv2": ws_conv_params(k2, conv_out, conv_out, 3),
            "cbn1": cbn_embed_params(k3, conv_out, num_classes),
            "cbn2": cbn_embed_params(k4, conv_out, num_classes),
        })
        params["rgb_layers"].append(ws_conv_params(k5, img_channels, conv_in, 1))
    key, k0, k1, k2, k3 = jax.random.split(key, 5)
    params["rgb_layers"].append(ws_conv_params(k0, img_channels, in_channels, 1))
    params["final_block"] = [
        ws_conv_params(k1, in_channels + 1, in_channels, 3),
        ws_conv_params(k2, in_channels, in_channels, 4),
        ws_conv_params(k3, in_channels, 1, 1),
    ]
    return params


def discriminator_forward(params, x, labels, alpha, *, steps, use_pallas=True):
    prog_blocks, rgb_layers = params["prog_blocks"], params["rgb_layers"]
    cur_step = len(prog_blocks) - steps
    out = ws_conv_bias_leaky(rgb_layers[cur_step], x, padding=0,
                             use_pallas=use_pallas)                   # fromRGB + leaky
    if steps == 0:
        out = minibatch_std(out)
        out = final_block(params["final_block"], out, use_pallas)
        return out.reshape(out.shape[0], -1)
    downscaled = ws_conv_bias_leaky(rgb_layers[cur_step + 1], avg_pool2(x), padding=0,
                                    use_pallas=use_pallas)
    out = avg_pool2(conv_block(prog_blocks[cur_step], out, labels,
                               use_pn=False, use_pallas=use_pallas))
    # TODO(synk): fade_in kept in plain JAX (two tiny elementwise ops, XLA fuses them).
    out = alpha * out + (1.0 - alpha) * downscaled
    for step in range(cur_step + 1, len(prog_blocks)):
        out = conv_block(prog_blocks[step], out, labels, use_pn=False, use_pallas=use_pallas)
        out = avg_pool2(out)
    out = minibatch_std(out)
    out = final_block(params["final_block"], out, use_pallas)
    return out.reshape(out.shape[0], -1)


if __name__ == "__main__":
    key = jax.random.PRNGKey(0)
    k_pn, k_af, k_x, k_params = jax.random.split(key, 4)

    # ---- standalone check of the PixelNorm Pallas kernel (the module's PixelNorm) ----
    xp = jax.random.normal(k_pn, (2, 4, 16, 16), dtype=jnp.float32)
    yp = pixel_norm(xp)
    jax.block_until_ready(yp)
    yp_ref = xp / jnp.sqrt(jnp.mean(xp * xp, axis=1, keepdims=True) + _PN_EPS)
    assert yp.shape == xp.shape and yp.dtype == xp.dtype
    assert jnp.allclose(yp, yp_ref, atol=1e-5, rtol=1e-5)

    # ---- standalone check of the fused affine+leaky Pallas kernel ----
    ka, kb, kc = jax.random.split(k_af, 3)
    xa = jax.random.normal(ka, (2, 4, 16, 16), dtype=jnp.float32)
    sc = jax.random.normal(kb, (2, 4), dtype=jnp.float32)
    sh = jax.random.normal(kc, (2, 4), dtype=jnp.float32)
    ya = affine_leaky(xa, sc, sh)
    jax.block_until_ready(ya)
    ya_ref = _affine_leaky_ref(xa, sc, sh, _LEAKY_SLOPE)
    assert jnp.allclose(ya, ya_ref, atol=1e-5, rtol=1e-5)

    # ---- full Discriminator forward at small shapes vs. pure-JAX reference ----
    in_channels = 32
    steps = 2                                   # input resolution 4 * 2**steps = 16
    img_size = 4 * 2 ** steps
    params = init_discriminator(k_params, in_channels, img_channels=3, num_classes=2)
    x = jax.random.normal(k_x, (2, 3, img_size, img_size), dtype=jnp.float32)
    labels = jnp.array([0, 1], dtype=jnp.int32)

    fwd = jax.jit(discriminator_forward, static_argnames=("steps", "use_pallas"))
    logits = fwd(params, x, labels, 0.5, steps=steps, use_pallas=True)
    jax.block_until_ready(logits)
    logits_ref = fwd(params, x, labels, 0.5, steps=steps, use_pallas=False)
    jax.block_until_ready(logits_ref)

    assert logits.shape == (2, 1)
    assert bool(jnp.all(jnp.isfinite(logits)))
    assert jnp.allclose(logits, logits_ref, atol=2e-4, rtol=2e-4)

    print("KERNEL_OK")
</pallas_src>

<mosaic_0001>
module attributes {stable_mosaic.version = 11 : i64} {
  func.func @_pixel_norm_kernel(%arg0: i32, %arg1: i32, %arg2: memref<2x4x256xf32, #tpu.memory_space<vmem>>, %arg3: memref<2x4x256xf32, #tpu.memory_space<vmem>>) attributes {dimension_semantics = [#tpu.dimension_semantics<parallel>, #tpu.dimension_semantics<parallel>], iteration_bounds = array<i64: 1, 1>, scalar_prefetch = 0 : i64, scratch_operands = 0 : i64, tpu.core_type = #tpu.core_type<tc>, window_params = [{transform_indices = @transform_0, window_bounds = array<i64: 2, 4, 256>}, {transform_indices = @transform_1, window_bounds = array<i64: 2, 4, 256>}]} {
    %c0 = arith.constant 0 : index
    %c0_0 = arith.constant 0 : index
    %c0_1 = arith.constant 0 : index
    %0 = vector.load %arg2[%c0, %c0_0, %c0_1] : memref<2x4x256xf32, #tpu.memory_space<vmem>>, vector<2x4x256xf32>
    %1 = arith.mulf %0, %0 : vector<2x4x256xf32>
    %cst = arith.constant dense<0.000000e+00> : vector<2x256xf32>
    %2 = vector.multi_reduction <add>, %1, %cst [1] : vector<2x4x256xf32> to vector<2x256xf32>
    %3 = vector.shape_cast %2 : vector<2x256xf32> to vector<2x1x256xf32>
    %cst_2 = arith.constant 2.500000e-01 : f32
    %4 = vector.broadcast %cst_2 : f32 to vector<2x1x256xf32>
    %5 = arith.mulf %3, %4 : vector<2x1x256xf32>
    %cst_3 = arith.constant 9.99999993E-9 : f32
    %6 = vector.broadcast %cst_3 : f32 to vector<2x1x256xf32>
    %7 = arith.addf %5, %6 : vector<2x1x256xf32>
    %8 = math.rsqrt %7 : vector<2x1x256xf32>
    %9 = vector.broadcast %8 : vector<2x1x256xf32> to vector<2x4x256xf32>
    %10 = arith.mulf %0, %9 : vector<2x4x256xf32>
    %c0_4 = arith.constant 0 : index
    %c0_5 = arith.constant 0 : index
    %c0_6 = arith.constant 0 : index
    %11 = vector.load %arg3[%c0_4, %c0_5, %c0_6] : memref<2x4x256xf32, #tpu.memory_space<vmem>>, vector<2x4x256xf32>
    tpu.vector_store %arg3[%c0_4, %c0_5, %c0_6], %10 {strides = array<i32>} : memref<2x4x256xf32, #tpu.memory_space<vmem>>, vector<2x4x256xf32>,
    return
  }
  func.func @transform_0(%arg0: i32, %arg1: i32) -> (i32, i32, i32) {
    %c0_i32 = arith.constant 0 : i32
    %c0_i32_0 = arith.constant 0 : i32
    return %arg0, %c0_i32, %arg1 : i32, i32, i32
  }
  func.func @transform_1(%arg0: i32, %arg1: i32) -> (i32, i32, i32) {
    %c0_i32 = arith.constant 0 : i32
    %c0_i32_0 = arith.constant 0 : i32
    return %arg0, %c0_i32, %arg1 : i32, i32, i32
  }
}

</mosaic_0001>

<bundles_post_ra>
// kernel: tpu_custom_call.1
= control target key start
LH: loop header
LB: loop body
LE: loop exit
PB: predicated region body
PF: predicated region fallthrough
CT: control target
= control target key end

     0   :  { %6 = vsyncpa [#allocation3], 0  ;;  %s185_s0 = inlined_call_operand.hbm [shape: f32[2,4,256], index: 0, kind: input, shape index: {}]   ;;  %s186_s1 = inlined_call_operand.hbm [shape: f32[2,4,256], index: 1, kind: output, shape index: {}]  }
   0x1   :  { %7 = vsyncpa [#allocation4], 0  ;;  %s159_s6 = smov [#allocation2]  }
   0x2   :  { %s13_s7 = sshll.u32 %s159_s6, 4  ;;  %s14_s7 = int_to_ptr.vmem [resolvable:$true] %s13_s7 }
   0x3   :  { %s123_s8 = scalar_lea.vmem %s14_s7, 256  ;;  %p128_p1 = scmp.lt.s32.totalorder %s14_s7, %s14_s7 }
   0x4   :  { %p124_p0 = scmp.ne.s32.totalorder %s14_s7, %s123_s8  ;;  %p129_p2 = scmp.lt.s32.totalorder %s123_s8, %s123_s8 }
   0x6   :  { %p130_p3 = por %p129_p2, %p128_p1 }
   0x8   :  { %p131_p4 = pnand %p130_p3, %p124_p0 }
   0xa   :  { %134 = shalt.err (!%p131_p4)
}
   0xb   :  { %s160_s9 = smov 128   ;;  %s161_s10 = smov 8  }
   0xc   :  { %19 = dma.hbm_to_vmem [thread:$0]  %s185_s0, 256, %s14_s7, [#allocation3], %s160_s9, %s160_s9, %s161_s10  }
   0xd   :  { %155 = dma.done.wait [#allocation3], 256  }
   0xe   :  { %156 = vsyncadd [#allocation3], 4294967040  ;;  %v23_v0 = vld [vmem:[#allocation2] sm:$0xff]  ;;  %vm33_vm0 = vcmask 1043456   ;;  %v24_v1 = vld [vmem:[#allocation2 + $0x8] sm:$0xff]  ;;  %s162_s0 = smov [#allocation5]  }
   0xf   :  { %v25_v2 = vmul.f32 %v23_v0, %v23_v0  ;;  %v26_v3 = vmul.f32 %v24_v1, %v24_v1  ;;  %s91_s13 = sshll.u32 %s162_s0, 4  ;;  %s92_s13 = int_to_ptr.vmem [resolvable:$true] %s91_s13 }
  0x10   :  { %s135_s14 = scalar_lea.vmem %s92_s13, 256  ;;  %p140_p6 = scmp.lt.s32.totalorder %s92_s13, %s92_s13 }
  0x11   :  { %v29_v4 = vcombine.high %v25_v2, %v25_v2  ;;  %v34_v5 = vsel %vm33_vm0, %v25_v2, 0.0  ;;  %v30_v6 = vcombine.high %v26_v3, %v26_v3  ;;  %v48_v7 = vsel %vm33_vm0, %v26_v3, 0.0  ;;  %p136_p5 = scmp.ne.s32.totalorder %s92_s13, %s135_s14  ;;  %p141_p7 = scmp.lt.s32.totalorder %s135_s14, %s135_s14 }
  0x12   :  { %v35_v8 = vrot.slane %v34_v5, 4  ;;  %v49_v9 = vrot.slane %v48_v7, 4 }
  0x13   :  { %v41_v10 = vsel %vm33_vm0, %v29_v4, 0.0  ;;  %v55_v11 = vsel %vm33_vm0, %v30_v6, 0.0  ;;  %p142_p8 = por %p141_p7, %p140_p6 }
  0x14   :  { %v36_v12 = vadd.f32 %v35_v8, %v34_v5  ;;  %v42_v13 = vrot.slane %v41_v10, 4  ;;  %v50_v14 = vadd.f32 %v49_v9, %v48_v7  ;;  %v56_v15 = vrot.slane %v55_v11, 4 }
  0x15   :  { %p143_p9 = pnand %p142_p8, %p136_p5 }
  0x16   :  { %v37_v16 = vrot.slane %v36_v12, 2  ;;  %v43_v17 = vadd.f32 %v42_v13, %v41_v10  ;;  %v51_v18 = vrot.slane %v50_v14, 2  ;;  %v57_v19 = vadd.f32 %v56_v15, %v55_v11 }
  0x18   :  { %v38_v20 = vadd.f32 %v37_v16, %v36_v12  ;;  %v44_v21 = vrot.slane %v43_v17, 2  ;;  %v52_v22 = vadd.f32 %v51_v18, %v50_v14  ;;  %v58_v23 = vrot.slane %v57_v19, 2 }
  0x1a   :  { %v39_v24 = vrot.slane %v38_v20, 1  ;;  %v45_v25 = vadd.f32 %v44_v21, %v43_v17  ;;  %v53_v26 = vrot.slane %v52_v22, 1  ;;  %v59_v27 = vadd.f32 %v58_v23, %v57_v19 }
  0x1c   :  { %v40_v28 = vadd.f32 %v39_v24, %v38_v20  ;;  %v46_v29 = vrot.slane %v45_v25, 1  ;;  %v54_v30 = vadd.f32 %v53_v26, %v52_v22  ;;  %v60_v31 = vrot.slane %v59_v27, 1 }
  0x1e   :  { %v47_v32 = vadd.f32 %v46_v29, %v45_v25  ;;  %v62_v33 = vmul.f32 0.25, %v40_v28  ;;  %v61_v34 = vadd.f32 %v60_v31, %v59_v27  ;;  %v64_v35 = vmul.f32 0.25, %v54_v30 }
  0x20   :  { %v63_v36 = vmul.f32 0.25, %v47_v32  ;;  %v66_v37 = vadd.f32 1e-08, %v62_v33  ;;  %v65_v38 = vmul.f32 0.25, %v61_v34  ;;  %v68_v39 = vadd.f32 1e-08, %v64_v35 }
  0x22   :  { %v67_v40 = vadd.f32 1e-08, %v63_v36  ;;  %107 = vrsqrt.f32 %v66_v37  ;;  %v69_v41 = vadd.f32 1e-08, %v65_v38 }
  0x23   :  { %109 = vrsqrt.f32 %v68_v39 }
  0x24   :  { %111 = vrsqrt.f32 %v67_v40 }
  0x25   :  { %113 = vrsqrt.f32 %v69_v41 }
  0x2f   :  { %v108_v42 = vpop.eup %107 }
  0x30   :  { %v110_v43 = vpop.eup %109 }
  0x31   :  { %v112_v44 = vpop.eup %111 }
  0x32   :  { %v114_v45 = vpop.eup %113  ;;  %v78_v46 = vcombine.low %v108_v42, %v112_v44 }
  0x33   :  { %v79_v47 = vcombine.low %v110_v43, %v114_v45 }
  0x34   :  { %v82_v48 = vmul.f32 %v78_v46, %v23_v0 }
  0x35   :  { %v83_v49 = vmul.f32 %v79_v47, %v24_v1 }
  0x36   :  { %84 = vst [vmem:[#allocation5] sm:$0xff] %v82_v48 }
  0x37   :  { %85 = vst [vmem:[#allocation5 + $0x8] sm:$0xff] %v83_v49 }
  0x38   :  { %146 = shalt.err (!%p143_p9)
}
  0x39   :  { %97 = dma.vmem_to_hbm [thread:$0]  %s92_s13, 256, %s186_s1, [#allocation4], %s160_s9, %s160_s9, %s161_s10  }
  0x3a   :  { %157 = dma.done.wait [#allocation4], 256  }
  0x3b   :  { %158 = vsyncadd [#allocation4], 4294967040 }
  0x3c   :  { %101 = vsyncpa [#allocation3], 1 }
  0x3d   :  { %102 = vsyncpa [#allocation4], 1 }

</bundles_post_ra>
